<compile_context>
chip_gen: v7x
topology: tpu7x:2x2x1
jax: 0.10.0
libtpu: 0.0.40
codegen_flags: <defaults>
</compile_context>

<pallas_src>
import math

import jax
import jax.numpy as jnp
from jax import lax
from jax.experimental import pallas as pl
from jax.experimental.pallas import tpu as pltpu


def _round_up(x: int, m: int) -> int:
    return (x + m - 1) // m * m


def _shrink_128(blk: int) -> int:
    return max(128, (blk // 2) // 128 * 128)


# --------------------------------------------------------------------------
# Phase 1: tiny pre-pass, O(B*D), whole-in-VMEM, no grid.
# --------------------------------------------------------------------------
def _make_prepass_kernel(m: float, batch_valid: int):
    cos_m = math.cos(m)
    sin_m = math.sin(m)
    threshold = math.cos(math.pi - m)
    mm_ = math.sin(math.pi - m) * m
    inv_b = 1.0 / float(batch_valid)

    def kernel(x_ref, wt_ref, t_ref, xn_ref, ctm_ref, ft_ref, t_out_ref):
        x = x_ref[...].astype(jnp.float32)          # (Bp, D)
        wt = wt_ref[...].astype(jnp.float32)        # (Bp, D) gathered w[:, label]

        # l2_norm(embeddings, axis=1) via rsqrt (EUP slot, ~free next to VPU work)
        x_n = x * lax.rsqrt(jnp.sum(x * x, axis=1, keepdims=True))

        # target_logit = <x_n, w[:,label]/||w[:,label]||>, clamped like the ref.
        wt_inv = lax.rsqrt(jnp.sum(wt * wt, axis=1, keepdims=True))   # (Bp, 1)
        target = jnp.clip(jnp.sum(x_n * wt, axis=1, keepdims=True) * wt_inv,
                          -1.0, 1.0)                                  # (Bp, 1)

        sin_t = jnp.sqrt(1.0 - target * target)
        ctm = target * cos_m - sin_t * sin_m                          # cos_theta_m
        ft = jnp.where(target > threshold, ctm, target - mm_)         # final target

        # t <- mean(target) * 0.01 + 0.99 * t  (exclude batch-padding rows)
        row = lax.broadcasted_iota(jnp.int32, target.shape, 0)
        valid = (row < batch_valid).astype(jnp.float32)
        t_new = jnp.sum(target * valid) * inv_b * 0.01 + 0.99 * t_ref[0]

        # Store normalized embeddings already in the MXU dtype (perf review #1).
        xn_ref[...] = x_n.astype(xn_ref.dtype)
        ctm_ref[...] = ctm
        ft_ref[...] = ft
        t_out_ref[0] = t_new

    return kernel


# --------------------------------------------------------------------------
# Phase 2: streaming pass, grid over lane-dense class tiles.
# --------------------------------------------------------------------------
def _make_stream_kernel(s: float, mxu_dtype, with_origin: bool, mxu_colnorm: bool):
    def body(xn_ref, w_ref, lbl_ref, ctm_ref, ft_ref, t_ref, out_ref, orig_ref):
        j = pl.program_id(0)
        blk = out_ref.shape[1]

        x_n = xn_ref[...]                            # (Bp, D), already mxu_dtype
        w = w_ref[...]                               # (D, blk) raw weight tile

        # Fold column normalization into a post-matmul scale (no (D,blk) temp).
        w32 = w.astype(jnp.float32)
        sq = w32 * w32
        if mxu_colnorm:
            # Small batch: the matmul is tiny, so push the sublane reduce onto
            # the MXU (square stays on VPU) to shorten the per-tile VPU path.
            ones = jnp.ones((8, sq.shape[0]), jnp.float32)
            col_sumsq = jnp.dot(ones, sq, preferred_element_type=jnp.float32)[0:1, :]
        else:
            col_sumsq = jnp.sum(sq, axis=0, keepdims=True)            # (1, blk)
        col_inv = lax.rsqrt(col_sumsq)

        cos = jnp.dot(x_n, w.astype(mxu_dtype),
                      preferred_element_type=jnp.float32) * col_inv
        cos = jnp.clip(cos, -1.0, 1.0)               # (Bp, blk)

        # Per-tile one-hot of the label column (iota + tile offset).
        # TODO(synk): lbl/ctm/ft could be packed into one side array to save
        # two width-1 resident blocks (low-priority per review).
        col = lax.broadcasted_iota(jnp.int32, (1, blk), 1) + j * blk
        onehot = col == lbl_ref[...]                 # (Bp, blk) bool

        t_new = t_ref[0]
        hard = cos * (t_new + cos)
        result = jnp.where(onehot, ft_ref[...],
                           jnp.where(cos > ctm_ref[...], hard, cos))

        out_ref[...] = (result * s).astype(out_ref.dtype)
        if with_origin:
            orig_ref[...] = (cos * s).astype(orig_ref.dtype)

    if with_origin:
        def kernel(xn_ref, w_ref, lbl_ref, ctm_ref, ft_ref, t_ref, out_ref, orig_ref):
            body(xn_ref, w_ref, lbl_ref, ctm_ref, ft_ref, t_ref, out_ref, orig_ref)
    else:
        def kernel(xn_ref, w_ref, lbl_ref, ctm_ref, ft_ref, t_ref, out_ref):
            body(xn_ref, w_ref, lbl_ref, ctm_ref, ft_ref, t_ref, out_ref, None)
    return kernel


def curricular_face(embeddings, kernel_w, label, t, *, m: float = 0.5, s: float = 64.0,
                    block_c: int = 512, mxu_dtype=jnp.bfloat16,
                    out_dtype=jnp.float32, origin_dtype=jnp.float32,
                    with_origin: bool = True, return_padded: bool = False,
                    vmem_budget_bytes: int = 28 << 20, vmem_limit_bytes=None):
    """CurricularFace forward.

    Returns (output*s, origin_cos*s or None, new_t_buffer).

    kernel_w may be stored in bf16 in HBM (recommended for throughput); it is
    read as-is — no wrapper-side full-weight cast is performed.  out_dtype /
    origin_dtype can be set to bf16 if the consumer allows, halving the output
    HBM stream.
    """
    B, D = embeddings.shape
    D2, C = kernel_w.shape
    assert D == D2, "embedding dim must match kernel rows"

    label = label.astype(jnp.int32)
    t1 = jnp.asarray(t, jnp.float32).reshape(1)

    # ---- batch padding (sublane alignment / MXU M-dim). Padded rows are
    #      masked out of the `t` update inside the pre-pass kernel. ----
    Bp = _round_up(B, 8)
    if Bp != B:
        x_p = jnp.concatenate(
            [embeddings.astype(jnp.float32), jnp.ones((Bp - B, D), jnp.float32)], axis=0)
        lbl_p = jnp.concatenate([label, jnp.zeros((Bp - B,), jnp.int32)], axis=0)
    else:
        x_p = embeddings.astype(jnp.float32)
        lbl_p = label

    # ---- lane-dense class tile selection (no weight padding / concat!) ----
    blk = _round_up(min(block_c, _round_up(C, 128)), 128)
    # v7x megacore: keep >= 2 class tiles so both TensorCores get work.
    while pl.cdiv(C, blk) < 2 and blk > 128:
        blk = _shrink_128(blk)

    w_bytes = kernel_w.dtype.itemsize
    x_bytes = jnp.dtype(mxu_dtype).itemsize
    out_bytes = jnp.dtype(out_dtype).itemsize
    orig_bytes = jnp.dtype(origin_dtype).itemsize

    def _phase2_bytes(blk_):
        b = 2 * D * blk_ * w_bytes                     # double-buffered weight tile
        b += 2 * Bp * D * x_bytes                      # resident x_n (count 2 for safety)
        b += 2 * Bp * blk_ * out_bytes                 # double-buffered output tile
        if with_origin:
            b += 2 * Bp * blk_ * orig_bytes
        b += 4 * Bp * blk_ * 4                         # in-kernel f32 intermediates
        return b

    # VMEM budget (v7x: 64 MiB/TC with 32 MiB default scoped limit).
    while _phase2_bytes(blk) > vmem_budget_bytes and blk > 128:
        blk = _shrink_128(blk)

    ntiles = pl.cdiv(C, blk)
    Cp = ntiles * blk           # padded OUTPUT width only (weight stays (D, C))

    # ---- gather target weight columns w[:, label] -> (Bp, D) ----
    # TODO(synk): this O(B*D) gather could be moved in-kernel with
    # PrefetchScalarGridSpec + pl.Element index_map; a plain XLA take is
    # negligible next to the streaming pass over the full weight.
    w_tgt = jnp.take(kernel_w.T, lbl_p, axis=0).astype(jnp.float32)

    # ---------------- phase 1: tiny pre-pass (no grid) ----------------
    p1_est = 6 * Bp * D * 4 + (2 << 20)
    p1_vmem = int(min(64 << 20, max(32 << 20, p1_est)))
    # TODO(synk): for very large B*D (beyond ~1/6 of VMEM) this pre-pass should
    # be tiled over the batch; set explicit vmem_limit for now (v5e 16 MiB default).

    x_n, cos_theta_m, final_target, t_new = pl.pallas_call(
        _make_prepass_kernel(m, B),
        out_shape=(
            jax.ShapeDtypeStruct((Bp, D), mxu_dtype),     # normalized embeddings (MXU dtype)
            jax.ShapeDtypeStruct((Bp, 1), jnp.float32),   # cos_theta_m
            jax.ShapeDtypeStruct((Bp, 1), jnp.float32),   # final_target_logit
            jax.ShapeDtypeStruct((1,), jnp.float32),      # updated t buffer
        ),
        in_specs=[
            pl.BlockSpec(memory_space=pltpu.MemorySpace.VMEM),
            pl.BlockSpec(memory_space=pltpu.MemorySpace.VMEM),
            pl.BlockSpec(memory_space=pltpu.MemorySpace.SMEM),
        ],
        out_specs=(
            pl.BlockSpec(memory_space=pltpu.MemorySpace.VMEM),
            pl.BlockSpec(memory_space=pltpu.MemorySpace.VMEM),
            pl.BlockSpec(memory_space=pltpu.MemorySpace.VMEM),
            pl.BlockSpec(memory_space=pltpu.MemorySpace.SMEM),
        ),
        compiler_params=pltpu.CompilerParams(vmem_limit_bytes=p1_vmem),
    )(x_p, w_tgt, t1)

    lbl2 = lbl_p.reshape(Bp, 1)

    # ---------------- phase 2: streaming pass over C tiles ----------------
    if vmem_limit_bytes is None:
        p2_vmem = int(min(64 << 20, max(32 << 20, _phase2_bytes(blk) + (8 << 20))))
    else:
        p2_vmem = int(vmem_limit_bytes)

    out_shapes = [jax.ShapeDtypeStruct((Bp, Cp), out_dtype)]
    out_specs = [pl.BlockSpec((Bp, blk), lambda j: (0, j))]
    if with_origin:
        out_shapes.append(jax.ShapeDtypeStruct((Bp, Cp), origin_dtype))
        out_specs.append(pl.BlockSpec((Bp, blk), lambda j: (0, j)))

    results = pl.pallas_call(
        _make_stream_kernel(s, mxu_dtype, with_origin, mxu_colnorm=(Bp <= 128)),
        out_shape=tuple(out_shapes),
        grid=(ntiles,),
        in_specs=[
            pl.BlockSpec((Bp, D), lambda j: (0, 0)),      # normalized embeddings (resident)
            pl.BlockSpec((D, blk), lambda j: (0, j)),     # weight tile (pipelined; ragged tail OK)
            pl.BlockSpec((Bp, 1), lambda j: (0, 0)),      # labels
            pl.BlockSpec((Bp, 1), lambda j: (0, 0)),      # cos_theta_m
            pl.BlockSpec((Bp, 1), lambda j: (0, 0)),      # final_target_logit
            pl.BlockSpec(memory_space=pltpu.MemorySpace.SMEM),  # updated t (scalar)
        ],
        out_specs=tuple(out_specs),
        compiler_params=pltpu.CompilerParams(
            dimension_semantics=("parallel",),
            vmem_limit_bytes=p2_vmem,
        ),
    )(x_n, kernel_w, lbl2, cos_theta_m, final_target, t_new)

    out = results[0]
    orig = results[1] if with_origin else None

    if not return_padded and (Bp != B or Cp != C):
        # TODO(synk): verify these slices fuse into the downstream consumer, or
        # set return_padded=True and mask there to avoid a second output pass.
        out = out[:B, :C]
        if with_origin:
            orig = orig[:B, :C]

    return out, orig, t_new


def curricular_face_ref(embeddings, kernel_w, label, t, m: float = 0.5, s: float = 64.0):
    """Pure-JAX reference mirroring the PyTorch forward (all f32)."""
    cos_m, sin_m = math.cos(m), math.sin(m)
    threshold = math.cos(math.pi - m)
    mm_ = math.sin(math.pi - m) * m
    x = embeddings / jnp.linalg.norm(embeddings, axis=1, keepdims=True)
    w = kernel_w / jnp.linalg.norm(kernel_w, axis=0, keepdims=True)
    cos = jnp.clip(x @ w, -1.0, 1.0)
    origin = cos
    B, C = cos.shape
    target = cos[jnp.arange(B), label][:, None]
    sin_t = jnp.sqrt(1.0 - target ** 2)
    ctm = target * cos_m - sin_t * sin_m
    mask = cos > ctm
    ft = jnp.where(target > threshold, ctm, target - mm_)
    t_new = jnp.mean(target) * 0.01 + 0.99 * t[0]
    cos_upd = jnp.where(mask, cos * (t_new + cos), cos)
    onehot = jnp.arange(C)[None, :] == label[:, None]
    cos_upd = jnp.where(onehot, ft, cos_upd)
    return cos_upd * s, origin * s, jnp.array([t_new], jnp.float32)


if __name__ == "__main__":
    # Small shapes: batch=12 (exercises batch padding to 16), in_features=64,
    # out_features=400 (exercises ragged last class tile + padded lane-dense output).
    B, D, C = 12, 64, 400
    key = jax.random.PRNGKey(0)
    k1, k2, k3 = jax.random.split(key, 3)

    embeddings = jax.random.normal(k1, (B, D), jnp.float32)
    kernel_w = jax.random.normal(k2, (D, C), jnp.float32) * 0.01   # nn.init.normal_(std=0.01)
    label = jax.random.randint(k3, (B,), 0, C, dtype=jnp.int32)
    t_buf = jnp.zeros((1,), jnp.float32)                           # registered buffer `t`

    out_r, orig_r, t_r = curricular_face_ref(embeddings, kernel_w, label, t_buf)

    # Strict numerical check: f32 MXU path vs PyTorch-faithful reference.
    out32, orig32, t32 = curricular_face(
        embeddings, kernel_w, label, t_buf, mxu_dtype=jnp.float32)
    jax.block_until_ready((out32, orig32, t32))
    assert out32.shape == (B, C) and orig32.shape == (B, C)
    assert jnp.allclose(out32, out_r, atol=1e-3, rtol=1e-3)
    assert jnp.allclose(orig32, orig_r, atol=1e-3, rtol=1e-3)
    assert jnp.allclose(t32, t_r, atol=1e-6)

    # Performance path: bf16 MXU operands (x_n stored bf16 by phase 1), f32 acc.
    # `out` has a mask-boundary discontinuity, so only the smooth quantities
    # (origin_cos, t) are checked against the f32 reference here.
    out16, orig16, t16 = curricular_face(embeddings, kernel_w, label, t_buf)
    jax.block_until_ready((out16, orig16, t16))
    assert out16.shape == (B, C) and orig16.shape == (B, C)
    assert bool(jnp.all(jnp.isfinite(out16))) and bool(jnp.all(jnp.isfinite(orig16)))
    assert jnp.allclose(orig16, orig_r, atol=0.5, rtol=2e-2)
    assert jnp.allclose(t16, t_r, atol=1e-6)

    # Reduced-output-traffic path: bf16 outputs, origin store skipped entirely.
    out_nb, orig_nb, t_nb = curricular_face(
        embeddings, kernel_w, label, t_buf, mxu_dtype=jnp.float32,
        out_dtype=jnp.bfloat16, with_origin=False)
    jax.block_until_ready((out_nb, t_nb))
    assert orig_nb is None
    assert out_nb.shape == (B, C) and out_nb.dtype == jnp.bfloat16
    assert jnp.allclose(out_nb.astype(jnp.float32), out_r, atol=0.75, rtol=1e-2)
    assert jnp.allclose(t_nb, t_r, atol=1e-6)

    print("KERNEL_OK")
</pallas_src>

<mosaic_0001>
module attributes {stable_mosaic.version = 11 : i64} {
  func.func @kernel(%arg0: memref<16x64xf32, #tpu.memory_space<vmem>>, %arg1: memref<16x64xf32, #tpu.memory_space<vmem>>, %arg2: memref<1xf32, #tpu.memory_space<smem>>, %arg3: memref<16x64xf32, #tpu.memory_space<vmem>>, %arg4: memref<16x1xf32, #tpu.memory_space<vmem>>, %arg5: memref<16x1xf32, #tpu.memory_space<vmem>>, %arg6: memref<1xf32, #tpu.memory_space<smem>>) attributes {dimension_semantics = [], scalar_prefetch = 0 : i64, scratch_operands = 0 : i64, tpu.core_type = #tpu.core_type<tc>} {
    %c0 = arith.constant 0 : index
    %c0_0 = arith.constant 0 : index
    %0 = vector.load %arg0[%c0, %c0_0] : memref<16x64xf32, #tpu.memory_space<vmem>>, vector<16x64xf32>
    %c0_1 = arith.constant 0 : index
    %c0_2 = arith.constant 0 : index
    %1 = vector.load %arg1[%c0_1, %c0_2] : memref<16x64xf32, #tpu.memory_space<vmem>>, vector<16x64xf32>
    %2 = arith.mulf %0, %0 : vector<16x64xf32>
    %cst = arith.constant dense<0.000000e+00> : vector<16xf32>
    %3 = vector.multi_reduction <add>, %2, %cst [1] : vector<16x64xf32> to vector<16xf32>
    %4 = vector.shape_cast %3 : vector<16xf32> to vector<16x1xf32>
    %5 = math.rsqrt %4 : vector<16x1xf32>
    %6 = vector.broadcast %5 : vector<16x1xf32> to vector<16x64xf32>
    %7 = arith.mulf %0, %6 : vector<16x64xf32>
    %8 = arith.mulf %1, %1 : vector<16x64xf32>
    %cst_3 = arith.constant dense<0.000000e+00> : vector<16xf32>
    %9 = vector.multi_reduction <add>, %8, %cst_3 [1] : vector<16x64xf32> to vector<16xf32>
    %10 = vector.shape_cast %9 : vector<16xf32> to vector<16x1xf32>
    %11 = math.rsqrt %10 : vector<16x1xf32>
    %12 = arith.mulf %7, %1 : vector<16x64xf32>
    %cst_4 = arith.constant dense<0.000000e+00> : vector<16xf32>
    %13 = vector.multi_reduction <add>, %12, %cst_4 [1] : vector<16x64xf32> to vector<16xf32>
    %14 = vector.shape_cast %13 : vector<16xf32> to vector<16x1xf32>
    %15 = arith.mulf %14, %11 : vector<16x1xf32>
    %cst_5 = arith.constant -1.000000e+00 : f32
    %cst_6 = arith.constant 1.000000e+00 : f32
    %16 = vector.broadcast %cst_5 : f32 to vector<16x1xf32>
    %17 = arith.maximumf %16, %15 : vector<16x1xf32>
    %18 = vector.broadcast %cst_6 : f32 to vector<16x1xf32>
    %19 = arith.minimumf %18, %17 : vector<16x1xf32>
    %20 = arith.mulf %19, %19 : vector<16x1xf32>
    %cst_7 = arith.constant 1.000000e+00 : f32
    %21 = vector.broadcast %cst_7 : f32 to vector<16x1xf32>
    %22 = arith.subf %21, %20 : vector<16x1xf32>
    %23 = math.sqrt %22 : vector<16x1xf32>
    %cst_8 = arith.constant 0.87758255 : f32
    %24 = vector.broadcast %cst_8 : f32 to vector<16x1xf32>
    %25 = arith.mulf %19, %24 : vector<16x1xf32>
    %cst_9 = arith.constant 0.47942555 : f32
    %26 = vector.broadcast %cst_9 : f32 to vector<16x1xf32>
    %27 = arith.mulf %23, %26 : vector<16x1xf32>
    %28 = arith.subf %25, %27 : vector<16x1xf32>
    %cst_10 = arith.constant -0.87758255 : f32
    %29 = vector.broadcast %cst_10 : f32 to vector<16x1xf32>
    %30 = arith.cmpf ogt, %19, %29 : vector<16x1xf32>
    %cst_11 = arith.constant 0.239712775 : f32
    %31 = vector.broadcast %cst_11 : f32 to vector<16x1xf32>
    %32 = arith.subf %19, %31 : vector<16x1xf32>
    %33 = arith.select %30, %28, %32 : vector<16x1xi1>, vector<16x1xf32>
    %34 = tpu.iota {dimensions = array<i32: 0>} : vector<16x1xi32>
    %c12_i32 = arith.constant 12 : i32
    %35 = vector.broadcast %c12_i32 : i32 to vector<16x1xi32>
    %36 = arith.cmpi slt, %34, %35 : vector<16x1xi32>
    %37 = arith.extui %36 : vector<16x1xi1> to vector<16x1xi32>
    %38 = arith.sitofp %37 : vector<16x1xi32> to vector<16x1xf32>
    %39 = arith.mulf %19, %38 : vector<16x1xf32>
    %40 = vector.shape_cast %39 : vector<16x1xf32> to vector<1x16x1xf32>
    %cst_12 = arith.constant dense<0.000000e+00> : vector<1xf32>
    %41 = vector.multi_reduction <add>, %40, %cst_12 [1, 2] : vector<1x16x1xf32> to vector<1xf32>
    %42 = vector.shape_cast %41 : vector<1xf32> to vector<1x1x1xf32>
    %43 = vector.extract %42[0, 0, 0] : f32 from vector<1x1x1xf32>
    %cst_13 = arith.constant 0.0833333358 : f32
    %44 = arith.mulf %43, %cst_13 : f32
    %cst_14 = arith.constant 0.00999999977 : f32
    %45 = arith.mulf %44, %cst_14 : f32
    %c0_15 = arith.constant 0 : index
    %46 = memref.load %arg2[%c0_15] : memref<1xf32, #tpu.memory_space<smem>>
    %cst_16 = arith.constant 9.900000e-01 : f32
    %47 = arith.mulf %cst_16, %46 : f32
    %48 = arith.addf %45, %47 : f32
    %c0_17 = arith.constant 0 : index
    %c0_18 = arith.constant 0 : index
    %49 = vector.load %arg3[%c0_17, %c0_18] : memref<16x64xf32, #tpu.memory_space<vmem>>, vector<16x64xf32>
    tpu.vector_store %arg3[%c0_17, %c0_18], %7 {strides = array<i32>} : memref<16x64xf32, #tpu.memory_space<vmem>>, vector<16x64xf32>,
    %c0_19 = arith.constant 0 : index
    %c0_20 = arith.constant 0 : index
    %50 = vector.load %arg4[%c0_19, %c0_20] : memref<16x1xf32, #tpu.memory_space<vmem>>, vector<16x1xf32>
    tpu.vector_store %arg4[%c0_19, %c0_20], %28 {strides = array<i32>} : memref<16x1xf32, #tpu.memory_space<vmem>>, vector<16x1xf32>,
    %c0_21 = arith.constant 0 : index
    %c0_22 = arith.constant 0 : index
    %51 = vector.load %arg5[%c0_21, %c0_22] : memref<16x1xf32, #tpu.memory_space<vmem>>, vector<16x1xf32>
    tpu.vector_store %arg5[%c0_21, %c0_22], %33 {strides = array<i32>} : memref<16x1xf32, #tpu.memory_space<vmem>>, vector<16x1xf32>,
    %c0_23 = arith.constant 0 : index
    %52 = memref.load %arg6[%c0_23] : memref<1xf32, #tpu.memory_space<smem>>
    memref.store %48, %arg6[%c0_23] : memref<1xf32, #tpu.memory_space<smem>>
    return
  }
}

</mosaic_0001>

<bundles_post_ra>
// kernel: tpu_custom_call.1
= control target key start
LH: loop header
LB: loop body
LE: loop exit
PB: predicated region body
PF: predicated region fallthrough
CT: control target
= control target key end

     0   :  { %13 = vsyncpa [#allocation4], 0  ;;  %s434_s0 = inlined_call_operand.hbm [shape: f32[16,64], index: 0, kind: input, shape index: {}]   ;;  %s435_s1 = inlined_call_operand.hbm [shape: f32[16,64], index: 1, kind: input, shape index: {}]   ;;  %s436_s2 = inlined_call_operand.<no memory space> [shape: f32[1], index: 2, kind: input, shape index: {}]   ;;  %s437_s3 = inlined_call_operand.hbm [shape: f32[16,64], index: 3, kind: output, shape index: {0}]   ;;  %s438_s4 = inlined_call_operand.vmem [shape: f32[16,1], index: 4, kind: output, shape index: {1}]   ;;  %s439_s5 = inlined_call_operand.vmem [shape: f32[16,1], index: 5, kind: output, shape index: {2}]   ;;  %s440_s6 = inlined_call_operand.hbm [shape: f32[1], index: 6, kind: output, shape index: {3}]  }
   0x1   :  { %14 = vsyncpa [#allocation8], 0 }
   0x2   :  { %15 = vsyncpa [#allocation5], 0 }
   0x3   :  { %16 = vsyncpa [#allocation6], 0  ;;  %s306_s21 = smov [#allocation3]   ;;  %s222_s25 = scalar_lea.hbm %s434_s0, 256 }
   0x4   :  { %s22_s22 = sshll.u32 %s306_s21, 4  ;;  %p223_p0 = scmp.ne.s32.totalorder %s434_s0, %s222_s25  ;;  %s23_s22 = int_to_ptr.vmem [resolvable:$true] %s22_s22 }
   0x5   :  { %p226_p1 = scmp.lt.u32.totalorder %s222_s25, %s434_s0 }
   0x7   :  { %p228_p2 = pnand %p226_p1, %p223_p0 }
   0x9   :  { %231 = shalt.err (!%p228_p2)
}
   0xa   :  { %s232_s30 = scalar_lea.vmem %s23_s22, 256  ;;  %p237_p4 = scmp.lt.s32.totalorder %s23_s22, %s23_s22 }
   0xb   :  { %p233_p3 = scmp.ne.s32.totalorder %s23_s22, %s232_s30  ;;  %p238_p5 = scmp.lt.s32.totalorder %s232_s30, %s232_s30 }
   0xd   :  { %p239_p6 = por %p238_p5, %p237_p4 }
   0xf   :  { %p240_p7 = pnand %p239_p6, %p233_p3 }
  0x11   :  { %243 = shalt.err (!%p240_p7)
}
  0x12   :  { %s307_s7 = smov 128   ;;  %s308_s8 = smov 8  }
  0x13   :  { %28 = dma.hbm_to_vmem [thread:$0]  %s434_s0, 256, %s23_s22, [#allocation4], %s307_s7, %s307_s7, %s308_s8  }
  0x14   :  { %s309_s11 = smov [#allocation7]   ;;  %s244_s15 = scalar_lea.hbm %s435_s1, 256 }
  0x15   :  { %s34_s12 = sshll.u32 %s309_s11, 4  ;;  %p245_p8 = scmp.ne.s32.totalorder %s435_s1, %s244_s15  ;;  %s35_s12 = int_to_ptr.vmem [resolvable:$true] %s34_s12 }
  0x16   :  { %p248_p9 = scmp.lt.u32.totalorder %s244_s15, %s435_s1 }
  0x18   :  { %p250_p10 = pnand %p248_p9, %p245_p8 }
  0x1a   :  { %253 = shalt.err (!%p250_p10)
}
  0x1b   :  { %s254_s20 = scalar_lea.vmem %s35_s12, 256  ;;  %p259_p12 = scmp.lt.s32.totalorder %s35_s12, %s35_s12 }
  0x1c   :  { %p255_p11 = scmp.ne.s32.totalorder %s35_s12, %s254_s20  ;;  %p260_p13 = scmp.lt.s32.totalorder %s254_s20, %s254_s20 }
  0x1e   :  { %p261_p0 = por %p260_p13, %p259_p12 }
  0x20   :  { %p262_p1 = pnand %p261_p0, %p255_p11 }
  0x22   :  { %265 = shalt.err (!%p262_p1)
}
  0x23   :  { %40 = dma.hbm_to_vmem [thread:$0]  %s435_s1, 256, %s35_s12, [#allocation8], %s307_s7, %s307_s7, %s308_s8  }
  0x24   :  { %298 = dma.done.wait [#allocation4], 256  }
  0x25   :  { %299 = vsyncadd [#allocation4], 4294967040 }
  0x26   :  { %300 = dma.done.wait [#allocation8], 256  }
  0x27   :  { %301 = vsyncadd [#allocation8], 4294967040  ;;  %v50_v0 = vld [vmem:[#allocation3 + $0x8] sm:$0xff]  ;;  %vm55_vm0 = vcmask 523264   ;;  %v49_v1 = vld [vmem:[#allocation3] sm:$0xff]  ;;  %v120_v23 = vlaneseq  ;;  %v310_v33 = vmov 0.0  }
  0x28   :  { %v54_v2 = vmul.f32 %v50_v0, %v50_v0  ;;  %v53_v3 = vmul.f32 %v49_v1, %v49_v1  ;;  %v52_v6 = vld [vmem:[#allocation7 + $0x8] sm:$0xff]  ;;  %v51_v9 = vld [vmem:[#allocation7] sm:$0xff]  ;;  %vm131_vm2 = vcmask 7168   ;;  %s311_s29 = smov [#allocation9]  }
  0x29   :  { %v67_v7 = vmul.f32 %v52_v6, %v52_v6  ;;  %v66_v10 = vmul.f32 %v51_v9, %v51_v9  ;;  %v121_v25 = vshrl.u32 %v120_v23, 7  ;;  %s162_s30 = sshll.u32 %s311_s29, 4  ;;  %s163_s30 = int_to_ptr.vmem [resolvable:$true] %s162_s30 }
  0x2a   :  { %v59_v4 = vsel %vm55_vm0, %v54_v2, 0.0  ;;  %v56_v5 = vsel %vm55_vm0, %v53_v3, 0.0  ;;  %s266_s9 = scalar_lea.vmem %s163_s30, 256  ;;  %p271_p3 = scmp.lt.s32.totalorder %s163_s30, %s163_s30 }
  0x2b   :  { %60 = vadd.xlane.f32.xlu0 %v59_v4  ;;  %v71_v8 = vsel %vm55_vm0, %v67_v7, 0.0  ;;  %v68_v11 = vsel %vm55_vm0, %v66_v10, 0.0  ;;  %v122_v26 = vadd.s32 8, %v121_v25  ;;  %p267_p2 = scmp.ne.s32.totalorder %s163_s30, %s266_s9  ;;  %p272_p4 = scmp.lt.s32.totalorder %s266_s9, %s266_s9 }
  0x2c   :  { %72 = vadd.xlane.f32.xlu1 %v71_v8 }
  0x2d   :  { %vm124_vm1 = vcmp.lt.s32.totalorder %v122_v26, 12  ;;  %p273_p5 = por %p272_p4, %p271_p3 }
  0x2e   :  { %v200_v34 = vsel %vm124_vm1, 1.0, %v310_v33 }
  0x2f   :  { %57 = vadd.xlane.f32.xlu0 %v56_v5  ;;  %p274_p6 = pnand %p273_p5, %p267_p2 }
  0x30   :  { %69 = vadd.xlane.f32.xlu1 %v68_v11 }
  0xb8   :  { %v61_v12 = vpop.xlane.xlu0 %60 }
  0xb9   :  { %210 = vrsqrt.f32 %v61_v12  ;;  %v73_v22 = vpop.xlane.xlu1 %72 }
  0xbc   :  { %v58_v13 = vpop.xlane.xlu0 %57 }
  0xbd   :  { %212 = vrsqrt.f32 %v58_v13  ;;  %v70_v24 = vpop.xlane.xlu1 %69 }
  0xbe   :  { %214 = vrsqrt.f32 %v73_v22 }
  0xbf   :  { %216 = vrsqrt.f32 %v70_v24 }
  0xc3   :  { %v211_v14 = vpop.eup %210 }
  0xc4   :  { %v65_v15 = vmul.f32 %v211_v14, %v50_v0 }
  0xc6   :  { %v77_v16 = vmul.f32 %v65_v15, %v52_v6  ;;  %150 = vst.msk [vmem:[#allocation9 + $0x8] sm:$0xff] %vm55_vm0, %v65_v15 }
  0xc7   :  { %v213_v17 = vpop.eup %212 }
  0xc8   :  { %v81_v18 = vsel %vm55_vm0, %v77_v16, 0.0  ;;  %v64_v19 = vmul.f32 %v213_v17, %v49_v1  ;;  %v215_v27 = vpop.eup %214 }
  0xc9   :  { %82 = vadd.xlane.f32.xlu0 %v81_v18  ;;  %v217_v30 = vpop.eup %216 }
  0xca   :  { %v76_v20 = vmul.f32 %v64_v19, %v51_v9  ;;  %149 = vst.msk [vmem:[#allocation9] sm:$0xff] %vm55_vm0, %v64_v19 }
  0xcc   :  { %v78_v21 = vsel %vm55_vm0, %v76_v20, 0.0 }
  0xcd   :  { %79 = vadd.xlane.f32.xlu1 %v78_v21 }
 0x156   :  { %v83_v28 = vpop.xlane.xlu0 %82 }
 0x157   :  { %v85_v29 = vmul.f32 %v215_v27, %v83_v28 }
 0x159   :  { %v197_v31 = vclamps-f32 %v85_v29, 1.0 }
 0x15a   :  { %v80_v32 = vpop.xlane.xlu1 %79 }
 0x15b   :  { %v91_v35 = vmul.f32 %v197_v31, %v197_v31  ;;  %v84_v36 = vmul.f32 %v217_v30, %v80_v32  ;;  %v130_v38 = vmul.f32 %v200_v34, %v197_v31  ;;  %v109_v51 = vmul.f32 0.87758255, %v197_v31 }
 0x15c   :  { %v199_v55 = vadd.f32 -0.23971277, %v197_v31  ;;  %vm115_vm6 = vcmp.gt.f32.partialorder %v197_v31, -0.87758255 }
 0x15d   :  { %v93_v37 = vsub.f32 1.0, %v91_v35  ;;  %v196_v39 = vclamps-f32 %v84_v36, 1.0  ;;  %v133_v42 = vsel %vm131_vm2, %v130_v38, 0.0 }
 0x15f   :  { %218 = vrsqrt.f32 %v93_v37  ;;  %v90_v40 = vmul.f32 %v196_v39, %v196_v39  ;;  %v132_v41 = vsel %vm131_vm2, %v196_v39, 0.0  ;;  %vm103_vm3 = vcmp.eq.f32.partialorder %v93_v37, inf }
 0x160   :  { %v134_v44 = vadd.f32 %v133_v42, %v132_v41  ;;  %v106_v47 = vand.u32 2147483648, %v93_v37  ;;  %vm105_vm4 = vcmp.eq.f32.partialorder %v93_v37, 0.0  ;;  %v108_v60 = vmul.f32 0.87758255, %v196_v39 }
 0x161   :  { %v92_v43 = vsub.f32 1.0, %v90_v40  ;;  %v198_v63 = vadd.f32 -0.23971277, %v196_v39  ;;  %vm114_vm8 = vcmp.gt.f32.partialorder %v196_v39, -0.87758255 }
 0x162   :  { %135 = vadd.xlane.f32.xlu0 %v134_v44 }
 0x163   :  { %220 = vrsqrt.f32 %v92_v43  ;;  %vm96_vm5 = vcmp.eq.f32.partialorder %v92_v43, inf  ;;  %v99_v56 = vand.u32 2147483648, %v92_v43  ;;  %vm98_vm7 = vcmp.eq.f32.partialorder %v92_v43, 0.0 }
 0x169   :  { %v219_v45 = vpop.eup %218 }
 0x16a   :  { %v102_v46 = vmul.f32 %v219_v45, %v93_v37 }
 0x16c   :  { %v104_v48 = vsel %vm103_vm3, %v93_v37, %v102_v46 }
 0x16d   :  { %v107_v49 = vsel %vm105_vm4, %v106_v47, %v104_v48  ;;  %v221_v50 = vpop.eup %220 }
 0x16e   :  { %v111_v52 = vmul.f32 0.47942555, %v107_v49  ;;  %v95_v53 = vmul.f32 %v221_v50, %v92_v43 }
 0x170   :  { %v113_v54 = vsub.f32 %v109_v51, %v111_v52  ;;  %v97_v57 = vsel %vm96_vm5, %v92_v43, %v95_v53 }
 0x171   :  { %v100_v59 = vsel %vm98_vm7, %v99_v56, %v97_v57 }
 0x172   :  { %v119_v58 = vsel %vm115_vm6, %v113_v54, %v199_v55  ;;  %152 = vst.msk [vmem:[%s438_s4 + $0x8] sm:$0xff] %vm131_vm2, %v113_v54  ;;  %v110_v61 = vmul.f32 0.47942555, %v100_v59 }
 0x173   :  { %154 = vst.msk [vmem:[%s439_s5 + $0x8] sm:$0xff] %vm131_vm2, %v119_v58 }
 0x174   :  { %v112_v62 = vsub.f32 %v108_v60, %v110_v61 }
 0x176   :  { %v118_v0 = vsel %vm114_vm8, %v112_v62, %v198_v63  ;;  %151 = vst.msk [vmem:[%s438_s4] sm:$0xff] %vm131_vm2, %v112_v62 }
 0x177   :  { %153 = vst.msk [vmem:[%s439_s5] sm:$0xff] %vm131_vm2, %v118_v0 }
 0x178   :  { %277 = shalt.err (!%p274_p6)
}
 0x179   :  { %s278_s12 = scalar_lea.hbm %s437_s3, 256 }
 0x17a   :  { %p279_p7 = scmp.ne.s32.totalorder %s437_s3, %s278_s12  ;;  %p282_p8 = scmp.lt.u32.totalorder %s278_s12, %s437_s3 }
 0x17c   :  { %p284_p9 = pnand %p282_p8, %p279_p7 }
 0x17e   :  { %287 = shalt.err (!%p284_p9)
}
 0x17f   :  { %168 = dma.vmem_to_hbm [thread:$0]  %s163_s30, 256, %s437_s3, [#allocation5], %s307_s7, %s307_s7, %s308_s8  }
 0x180   :  { %s147_s20 = smul.f32 0.99, %s436_s2  ;;  %s288_s3 = scalar_lea.hbm %s440_s6, 16 }
 0x181   :  { %p289_p10 = scmp.ne.s32.totalorder %s440_s6, %s288_s3  ;;  %p292_p11 = scmp.lt.u32.totalorder %s288_s3, %s440_s6 }
 0x183   :  { %p294_p12 = pnand %p292_p11, %p289_p10 }
 0x1ef   :  { %v136_v1 = vpop.xlane.xlu0 %135 }
 0x1f0   :  { %v137_v2 = vrot.slane %v136_v1, 4 }
 0x1f2   :  { %v138_v3 = vadd.f32 %v137_v2, %v136_v1 }
 0x1f4   :  { %v139_v4 = vrot.slane %v138_v3, 2 }
 0x1f6   :  { %v140_v5 = vadd.f32 %v139_v4, %v138_v3 }
 0x1f8   :  { %v141_v6 = vrot.slane %v140_v5, 1 }
 0x1fa   :  { %v142_v7 = vadd.f32 %v141_v6, %v140_v5 }
 0x1fc   :  { %201 = vpush %v142_v7 }
 0x22d   :  { %s202_s17 = spop %201 }
 0x22e   :  { %s144_s0 = smul.f32 0.083333336, %s202_s17 }
 0x230   :  { %s145_s21 = smul.f32 0.01, %s144_s0 }
 0x232   :  { %s148_s1 = sadd.f32 %s147_s20, %s145_s21 }
 0x234   :  { %156 = sst [smem:[#allocation10]] %s148_s1 }
 0x235   :  { %297 = shalt.err (!%p294_p12)
}
 0x236   :  { %s312_s26 = smov [#allocation10]  }
 0x237   :  { %180 = dma.smem_to_hbm %s312_s26, 16, %s440_s6, [#allocation6]  }
 0x238   :  { %302 = dma.done.wait [#allocation5], 256  }
 0x239   :  { %303 = vsyncadd [#allocation5], 4294967040 }
 0x23a   :  { %304 = dma.done.wait [#allocation6], 16  }
 0x23b   :  { %305 = vsyncadd [#allocation6], 4294967280 }
 0x23c   :  { %191 = sfence }
 0x23d   :  { %192 = vsyncpa [#allocation4], 1 }
 0x23e   :  { %193 = vsyncpa [#allocation8], 1 }
 0x23f   :  { %194 = vsyncpa [#allocation5], 1 }
 0x240   :  { %195 = vsyncpa [#allocation6], 1 }

</bundles_post_ra>
